<compile_context>
chip_gen: v6e
topology: v6e:2x2x1
jax: 0.10.0
libtpu: 0.0.40
codegen_flags: <defaults>
</compile_context>

<pallas_src>
import functools

import jax
import jax.numpy as jnp
from jax.experimental import pallas as pl
from jax.experimental.pallas import tpu as pltpu

HP = 128  # lane-padded width for hidden features (one vreg of lanes)


def _round_up(x, m):
    return (x + m - 1) // m * m


def actor_kernel(x_ref, w_ref, b_ref, out_ref, *, state_size):
    # x_ref:   (TB, S)      f32    activation tile (cast to bf16 in-kernel)
    # w_ref:   (HP, 3*HP)   bf16   packed [w1 | w2 | w3], zero-padded
    # b_ref:   (1, 3*HP)    f32    packed [b1 | b2 | b3]; fc3 pad lanes = -1e30
    # out_ref: (TB, A)      f32    narrow output: only the real action lanes
    x = x_ref[...].astype(jnp.bfloat16)   # VPU cast, hidden under input DMA

    w1 = w_ref[0:state_size, 0:HP]                 # (S, HP)
    w2 = w_ref[:, HP:2 * HP]                       # (HP, HP), rows >= H are 0
    w3 = w_ref[:, 2 * HP:3 * HP]                   # (HP, HP), cols >= A are 0
    b1 = b_ref[:, 0:HP]
    b2 = b_ref[:, HP:2 * HP]
    b3 = b_ref[:, 2 * HP:3 * HP]                   # pad lanes are -1e30

    # fc1 + relu (bf16 MXU, f32 accumulate, f32 elementwise)
    h1 = jnp.maximum(
        jnp.dot(x, w1, preferred_element_type=jnp.float32) + b1, 0.0)

    # fc2 + relu (padded cols of h1 are exactly 0; padded rows of w2 are 0)
    h2 = jnp.maximum(
        jnp.dot(h1.astype(jnp.bfloat16), w2,
                preferred_element_type=jnp.float32) + b2, 0.0)

    # fc3 + softmax over the 128-wide padded row.  Padded lanes carry -1e30
    # from b3, so they never win the max and exp() underflows to exactly 0.
    logits = jnp.dot(h2.astype(jnp.bfloat16), w3,
                     preferred_element_type=jnp.float32) + b3
    m = jnp.max(logits, axis=-1, keepdims=True)
    e = jnp.exp(logits - m)
    denom = jnp.sum(e, axis=-1, keepdims=True)
    probs = e / denom                              # exact f32 division: rows sum to 1

    # Narrow (masked) store of only the real action lanes.
    out_ref[...] = probs[:, :out_ref.shape[-1]].astype(out_ref.dtype)


def pack_actor_params(params, act_dtype=jnp.bfloat16):
    """Pack (w1,b1,w2,b2,w3,b3) into one bf16 weight slab and one f32 bias slab."""
    w1, b1, w2, b2, w3, b3 = params
    s, h = w1.shape
    a = w3.shape[1]
    assert s <= HP and h <= HP and a <= HP, "packed layout assumes dims <= 128"

    w_pack = jnp.zeros((HP, 3 * HP), jnp.float32)
    w_pack = w_pack.at[:s, 0:h].set(w1)
    w_pack = w_pack.at[:h, HP:HP + h].set(w2)
    w_pack = w_pack.at[:h, 2 * HP:2 * HP + a].set(w3)

    b_pack = jnp.zeros((1, 3 * HP), jnp.float32)
    b_pack = b_pack.at[:, 0:h].set(b1)
    b_pack = b_pack.at[:, HP:HP + h].set(b2)
    # Pad lanes of the fc3 bias get a huge negative so softmax ignores them.
    b_pack = b_pack.at[:, 2 * HP + a:3 * HP].set(-1e30)
    b_pack = b_pack.at[:, 2 * HP:2 * HP + a].set(b3)

    return w_pack.astype(act_dtype), b_pack  # biases stay f32


def actor_forward(x, params, *, batch_tile=2048):
    """x: (B, ...) any trailing shape; flattened to (B, state_size)."""
    b = x.shape[0]
    x2d = x.reshape(b, -1)                 # stays f32 in HBM; cast happens in-kernel
    s = x2d.shape[1]
    a = params[4].shape[1]                 # action_size from w3

    # Batch tile: multiple of 16 (bf16 sublane packing), floor 16, cap 4096
    # (double-buffered x/out blocks + f32 intermediates stay well under v7x's
    # 64 MiB VMEM and v5e's 16 MiB default scoped limit).
    tb = max(16, min(_round_up(min(batch_tile, 4096), 16), _round_up(b, 16)))
    b_pad = _round_up(b, tb)
    if b_pad != b:                         # pad only when strictly needed
        x2d = jnp.pad(x2d, ((0, b_pad - b), (0, 0)))

    w_pack, b_pack = pack_actor_params(params, act_dtype=jnp.bfloat16)

    out = pl.pallas_call(
        functools.partial(actor_kernel, state_size=s),
        out_shape=jax.ShapeDtypeStruct((b_pad, a), jnp.float32),
        grid=(b_pad // tb,),
        in_specs=[
            pl.BlockSpec((tb, s), lambda i: (i, 0)),          # x: batch-tiled, f32
            pl.BlockSpec((HP, 3 * HP), lambda i: (0, 0)),     # packed weights (resident)
            pl.BlockSpec((1, 3 * HP), lambda i: (0, 0)),      # packed biases  (resident)
        ],
        out_specs=pl.BlockSpec((tb, a), lambda i: (i, 0)),    # narrow output
        compiler_params=pltpu.CompilerParams(
            dimension_semantics=("parallel",)),               # megacore on v7x
    )(x2d, w_pack, b_pack)

    return out if b_pad == b else out[:b]


def init_actor_params(key, state_size, hidden_size, action_size):
    """Deterministic init mimicking nn.Linear's U(-1/sqrt(fan_in), 1/sqrt(fan_in))."""
    ks = jax.random.split(key, 6)

    def linear(kw, kb, fan_in, fan_out):
        bound = 1.0 / jnp.sqrt(jnp.float32(fan_in))
        # stored as (in, out) so the kernel computes x @ W
        w = jax.random.uniform(kw, (fan_in, fan_out), jnp.float32, -bound, bound)
        bb = jax.random.uniform(kb, (1, fan_out), jnp.float32, -bound, bound)
        return w, bb

    w1, b1 = linear(ks[0], ks[1], state_size, hidden_size)
    w2, b2 = linear(ks[2], ks[3], hidden_size, hidden_size)
    w3, b3 = linear(ks[4], ks[5], hidden_size, action_size)
    return (w1, b1, w2, b2, w3, b3)


def actor_reference(x, params):
    """Pure-JAX reference with the same bf16 MXU boundary, f32 accumulate."""
    b = x.shape[0]
    x2d = x.reshape(b, -1)
    w1, b1, w2, b2, w3, b3 = params

    def lin(h, w, bb):
        return jnp.dot(h.astype(jnp.bfloat16), w.astype(jnp.bfloat16),
                       preferred_element_type=jnp.float32) + bb

    h1 = jax.nn.relu(lin(x2d, w1, b1))
    h2 = jax.nn.relu(lin(h1, w2, b2))
    return jax.nn.softmax(lin(h2, w3, b3), axis=-1)


if __name__ == "__main__":
    # hyp.observation_type == 'pixel' with rows=4, columns=4 -> state_size = 4*4*2 = 32
    rows, columns = 4, 4
    state_size = rows * columns * 2
    hidden_size = 32
    action_size = 3
    batch = 256          # small demo batch; batch_tile=128 -> 2 grid steps

    key = jax.random.PRNGKey(0)
    k_params, k_x = jax.random.split(key)
    params = init_actor_params(k_params, state_size, hidden_size, action_size)

    # pixel observation: (batch, 2, rows, columns) -> flattened inside forward
    x = jax.random.normal(k_x, (batch, 2, rows, columns), dtype=jnp.float32)

    out = actor_forward(x, params, batch_tile=128)
    out = jax.block_until_ready(out)

    ref = actor_reference(x, params)
    assert out.shape == (batch, action_size)
    # bf16 matmul boundary on both paths -> tolerance ~1e-3
    assert jnp.allclose(out, ref, atol=2e-3, rtol=2e-3)
    # exact f32 division in the kernel -> rows sum to 1 to f32 precision
    assert jnp.allclose(jnp.sum(out, axis=-1), 1.0, atol=1e-3)

    print("KERNEL_OK")
</pallas_src>

<mosaic_0001>
module attributes {stable_mosaic.version = 11 : i64} {
  func.func @actor_kernel(%arg0: i32, %arg1: memref<128x32xf32, #tpu.memory_space<vmem>>, %arg2: memref<128x384xbf16, #tpu.memory_space<vmem>>, %arg3: memref<1x384xf32, #tpu.memory_space<vmem>>, %arg4: memref<128x3xf32, #tpu.memory_space<vmem>>) attributes {dimension_semantics = [#tpu.dimension_semantics<parallel>], iteration_bounds = array<i64: 2>, scalar_prefetch = 0 : i64, scratch_operands = 0 : i64, tpu.core_type = #tpu.core_type<tc>, window_params = [{transform_indices = @transform_0, window_bounds = array<i64: 128, 32>}, {pipeline_mode = #tpu.pipeline_mode<synchronous>, transform_indices = @transform_1, window_bounds = array<i64: 128, 384>}, {pipeline_mode = #tpu.pipeline_mode<synchronous>, transform_indices = @transform_2, window_bounds = array<i64: 1, 384>}, {transform_indices = @transform_3, window_bounds = array<i64: 128, 3>}]} {
    %c0 = arith.constant 0 : index
    %c0_0 = arith.constant 0 : index
    %0 = vector.load %arg1[%c0, %c0_0] : memref<128x32xf32, #tpu.memory_space<vmem>>, vector<128x32xf32>
    %1 = arith.truncf %0 : vector<128x32xf32> to vector<128x32xbf16>
    %c0_1 = arith.constant 0 : index
    %c0_2 = arith.constant 0 : index
    %2 = vector.load %arg2[%c0_1, %c0_2] : memref<128x384xbf16, #tpu.memory_space<vmem>>, vector<32x128xbf16>
    %c0_3 = arith.constant 0 : index
    %c128 = arith.constant 128 : index
    %3 = vector.load %arg2[%c0_3, %c128] : memref<128x384xbf16, #tpu.memory_space<vmem>>, vector<128x128xbf16>
    %c0_4 = arith.constant 0 : index
    %c256 = arith.constant 256 : index
    %4 = vector.load %arg2[%c0_4, %c256] : memref<128x384xbf16, #tpu.memory_space<vmem>>, vector<128x128xbf16>
    %c0_5 = arith.constant 0 : index
    %c0_6 = arith.constant 0 : index
    %5 = vector.load %arg3[%c0_5, %c0_6] : memref<1x384xf32, #tpu.memory_space<vmem>>, vector<1x128xf32>
    %c0_7 = arith.constant 0 : index
    %c128_8 = arith.constant 128 : index
    %6 = vector.load %arg3[%c0_7, %c128_8] : memref<1x384xf32, #tpu.memory_space<vmem>>, vector<1x128xf32>
    %c0_9 = arith.constant 0 : index
    %c256_10 = arith.constant 256 : index
    %7 = vector.load %arg3[%c0_9, %c256_10] : memref<1x384xf32, #tpu.memory_space<vmem>>, vector<1x128xf32>
    %cst = arith.constant dense<0.000000e+00> : vector<128x128xf32>
    %8 = tpu.matmul %1, %2, %cst {dimension_numbers = #tpu.dot_dimension_numbers<[1], [0], [0], [1], [0, 0, 1, 1], [], []>} : vector<128x32xbf16>, vector<32x128xbf16>, vector<128x128xf32> -> vector<128x128xf32>
    %9 = vector.broadcast %5 : vector<1x128xf32> to vector<128x128xf32>
    %10 = arith.addf %8, %9 : vector<128x128xf32>
    %cst_11 = arith.constant 0.000000e+00 : f32
    %11 = vector.broadcast %cst_11 : f32 to vector<128x128xf32>
    %12 = arith.maximumf %10, %11 : vector<128x128xf32>
    %13 = arith.truncf %12 : vector<128x128xf32> to vector<128x128xbf16>
    %cst_12 = arith.constant dense<0.000000e+00> : vector<128x128xf32>
    %14 = tpu.matmul %13, %3, %cst_12 {dimension_numbers = #tpu.dot_dimension_numbers<[1], [0], [0], [1], [0, 0, 1, 1], [], []>} : vector<128x128xbf16>, vector<128x128xbf16>, vector<128x128xf32> -> vector<128x128xf32>
    %15 = vector.broadcast %6 : vector<1x128xf32> to vector<128x128xf32>
    %16 = arith.addf %14, %15 : vector<128x128xf32>
    %cst_13 = arith.constant 0.000000e+00 : f32
    %17 = vector.broadcast %cst_13 : f32 to vector<128x128xf32>
    %18 = arith.maximumf %16, %17 : vector<128x128xf32>
    %19 = arith.truncf %18 : vector<128x128xf32> to vector<128x128xbf16>
    %cst_14 = arith.constant dense<0.000000e+00> : vector<128x128xf32>
    %20 = tpu.matmul %19, %4, %cst_14 {dimension_numbers = #tpu.dot_dimension_numbers<[1], [0], [0], [1], [0, 0, 1, 1], [], []>} : vector<128x128xbf16>, vector<128x128xbf16>, vector<128x128xf32> -> vector<128x128xf32>
    %21 = vector.broadcast %7 : vector<1x128xf32> to vector<128x128xf32>
    %22 = arith.addf %20, %21 : vector<128x128xf32>
    %cst_15 = arith.constant dense<0xFF800000> : vector<128xf32>
    %23 = vector.multi_reduction <maximumf>, %22, %cst_15 [1] : vector<128x128xf32> to vector<128xf32>
    %24 = vector.shape_cast %23 : vector<128xf32> to vector<128x1xf32>
    %25 = vector.broadcast %24 : vector<128x1xf32> to vector<128x128xf32>
    %26 = arith.subf %22, %25 : vector<128x128xf32>
    %27 = math.exp %26 : vector<128x128xf32>
    %cst_16 = arith.constant dense<0.000000e+00> : vector<128xf32>
    %28 = vector.multi_reduction <add>, %27, %cst_16 [1] : vector<128x128xf32> to vector<128xf32>
    %29 = vector.shape_cast %28 : vector<128xf32> to vector<128x1xf32>
    %30 = vector.broadcast %29 : vector<128x1xf32> to vector<128x128xf32>
    %31 = arith.divf %27, %30 : vector<128x128xf32>
    %32 = vector.extract_strided_slice %31 {offsets = [0, 0], sizes = [128, 3], strides = [1, 1]} : vector<128x128xf32> to vector<128x3xf32>
    %c0_17 = arith.constant 0 : index
    %c0_18 = arith.constant 0 : index
    %33 = vector.load %arg4[%c0_17, %c0_18] : memref<128x3xf32, #tpu.memory_space<vmem>>, vector<128x3xf32>
    tpu.vector_store %arg4[%c0_17, %c0_18], %32 {strides = array<i32>} : memref<128x3xf32, #tpu.memory_space<vmem>>, vector<128x3xf32>,
    return
  }
  func.func @transform_0(%arg0: i32) -> (i32, i32) {
    %c0_i32 = arith.constant 0 : i32
    %c0_i32_0 = arith.constant 0 : i32
    return %arg0, %c0_i32 : i32, i32
  }
  func.func @transform_1(%arg0: i32) -> (i32, i32) {
    %c0_i32 = arith.constant 0 : i32
    %c0_i32_0 = arith.constant 0 : i32
    %c0_i32_1 = arith.constant 0 : i32
    return %c0_i32, %c0_i32_0 : i32, i32
  }
  func.func @transform_2(%arg0: i32) -> (i32, i32) {
    %c0_i32 = arith.constant 0 : i32
    %c0_i32_0 = arith.constant 0 : i32
    %c0_i32_1 = arith.constant 0 : i32
    return %c0_i32, %c0_i32_0 : i32, i32
  }
  func.func @transform_3(%arg0: i32) -> (i32, i32) {
    %c0_i32 = arith.constant 0 : i32
    %c0_i32_0 = arith.constant 0 : i32
    return %arg0, %c0_i32 : i32, i32
  }
}

</mosaic_0001>

<bundles_post_ra>
// kernel: tpu_custom_call.1
= control target key start
LH: loop header
LB: loop body
LE: loop exit
PB: predicated region body
PF: predicated region fallthrough
CT: control target
= control target key end

     0   :  { %s1229_s12 = smov 0   ;;  %s1468_s0 = inlined_call_operand.vmem [shape: f32[256,32], index: 0, kind: input, shape index: {}]   ;;  %s1469_s1 = inlined_call_operand.vmem [shape: bf16[128,384], index: 1, kind: input, shape index: {}]   ;;  %s1470_s2 = inlined_call_operand.vmem [shape: f32[1,384], index: 2, kind: input, shape index: {}]   ;;  %s1471_s3 = inlined_call_operand.vmem [shape: f32[256,3], index: 3, kind: output, shape index: {}]  }
   0x1 LB: > { %s945_s13 = sadd.s32 4294967295, %s1207_s12   ;;  %p949_p0 = scmp.ge.s32.totalorder %s1207_s12, 1  ;;  %s1207_s12 = sphi %s1229_s12, %s13_s12  }
   0x2   : > { %p138_p1 = scmp.lt.s32.totalorder %s1207_s12, 3 }
   0x4   : > { %p139_p2 = pnand %p949_p0, %p138_p1 }
   0x5   : > { %s950_s18 = sshll.u32 (!%p139_p2), %s945_s13, 4 }
   0x6   : > { %142 = sbr.rel (%p139_p2) target bundleno = 972 (0x3cc), region = 32  ;;  %p163_p3 = scmp.lt.s32.totalorder (!%p139_p2), %s950_s18, 31 }
   0xb   : > { %v1119_v0 = vld [vmem:[%s1469_s1 + $0x18] ss:$12 sps:$4 sm:$0xff]   ;;  %v1120_v1 = vld [vmem:[%s1469_s1] ss:$12 sps:$4 sm:$0xff]   ;;  %s1473_s18 = smov (!%p163_p3, %s950_s18), 31  ;;  %vm256_vm0 = vcmask 261120  }
   0xc   : > { %1027 = vmatprep.subr.bf16.mxu0 %v1119_v0  ;;  %v1121_v2 = vld [vmem:[%s1469_s1 + $0xac] ss:$12 sps:$4 sm:$0xff]   ;;  %v1122_v3 = vld [vmem:[%s1469_s1 + $0x94] ss:$12 sps:$4 sm:$0xff]   ;;  %v1123_v4 = vld [vmem:[%s1469_s1 + $0x7c] ss:$12 sps:$4 sm:$0xff]  }
   0xd   : > { %1028 = vmatpush3.bf16.msra.mxu0 %v1119_v0  ;;  %1047 = vmatprep.subr.bf16.mxu1 %v1121_v2  ;;  %s951_s25 = sshll.u32 %s1473_s18, 3  ;;  %v1124_v14 = vld [vmem:[%s1469_s1 + $0x64] ss:$12 sps:$4 sm:$0xff]   ;;  %v1125_v18 = vld [vmem:[%s1469_s1 + $0x4c] ss:$12 sps:$4 sm:$0xff]   ;;  %vm872_vm1 = vcmask 23552  }
   0xe   : > { %1029 = vmatprep.subr.bf16.mxu0 %v1120_v1  ;;  %1048 = vmatpush3.bf16.msra.mxu1 %v1121_v2  ;;  %s1260_s28 = scalar_lea.vmem %s1468_s0, %s951_s25  ;;  %v1126_v31 = vld [vmem:[%s1469_s1 + $0x34] ss:$12 sps:$4 sm:$0xff]   ;;  %v1127_v32 = vld [vmem:[%s1469_s1 + $0x1c] ss:$12 sps:$4 sm:$0xff]   ;;  %v1128_v33 = vld [vmem:[%s1469_s1 + $0x4] ss:$12 sps:$4 sm:$0xff]   ;;  %s1415_s13 = scalar_lea.vmem %s1471_s3, %s951_s25 }
   0xf   : > { %1049 = vmatprep.subr.bf16.mxu1 %v1122_v3  ;;  %v175_v5 = vld [vmem:[%s1260_s28] sm:$0xff]  ;;  %v176_v6 = vld [vmem:[%s1260_s28 + $0x8] sm:$0xff]  ;;  %v177_v7 = vld [vmem:[%s1260_s28 + $0x10] sm:$0xff] }
  0x10   : > { %v191_v8 = vpack.c.bf16 %v176_v6, %v175_v5  ;;  %v178_v9 = vld [vmem:[%s1260_s28 + $0x18] sm:$0xff]  ;;  %v179_v10 = vld [vmem:[%s1260_s28 + $0x20] sm:$0xff]  ;;  %v180_v11 = vld [vmem:[%s1260_s28 + $0x28] sm:$0xff] }
  0x11   : > { %1030 = vmatpush3.bf16.msra.mxu0 %v1120_v1  ;;  %v192_v12 = vpack.c.bf16 %v178_v9, %v177_v7  ;;  %v193_v13 = vpack.c.bf16 %v180_v11, %v179_v10  ;;  %v181_v15 = vld [vmem:[%s1260_s28 + $0x30] sm:$0xff]  ;;  %v182_v16 = vld [vmem:[%s1260_s28 + $0x38] sm:$0xff]  ;;  %v183_v17 = vld [vmem:[%s1260_s28 + $0x40] sm:$0xff] }
  0x12   : > { %1050 = vmatpush3.bf16.msra.mxu1 %v1122_v3  ;;  %1031 = vmatprep.mubr.msk.bf16.mxu0 %vm256_vm0, %v191_v8  ;;  %v184_v19 = vld [vmem:[%s1260_s28 + $0x48] sm:$0xff]  ;;  %v194_v20 = vpack.c.bf16 %v182_v16, %v181_v15  ;;  %v185_v22 = vld [vmem:[%s1260_s28 + $0x50] sm:$0xff]  ;;  %v186_v23 = vld [vmem:[%s1260_s28 + $0x58] sm:$0xff] }
  0x13   : > { %1051 = vmatprep.subr.bf16.mxu1 %v1123_v4  ;;  %v195_v21 = vpack.c.bf16 %v184_v19, %v183_v17  ;;  %v187_v24 = vld [vmem:[%s1260_s28 + $0x60] sm:$0xff]  ;;  %v188_v25 = vld [vmem:[%s1260_s28 + $0x68] sm:$0xff]  ;;  %v196_v26 = vpack.c.bf16 %v186_v23, %v185_v22  ;;  %v189_v28 = vld [vmem:[%s1260_s28 + $0x70] sm:$0xff] }
  0x14   : > { %1032 = vmatmul.mubr.msk.bf16.vlgmr.msra.gmra.mxu0 %vm256_vm0, %v192_v12  ;;  %v197_v27 = vpack.c.bf16 %v188_v25, %v187_v24  ;;  %v190_v29 = vld [vmem:[%s1260_s28 + $0x78] sm:$0xff]  ;;  %v1131_v36 = vld [vmem:[%s1469_s1 + $0x80] ss:$12 sps:$4 sm:$0xff]   ;;  %v1132_v37 = vld [vmem:[%s1469_s1 + $0x68] ss:$12 sps:$4 sm:$0xff]  }
  0x15   : > { %1035 = vmatprep.mubr.msk.bf16.mxu0 %vm256_vm0, %v193_v13  ;;  %v198_v30 = vpack.c.bf16 %v190_v29, %v189_v28  ;;  %v1129_v34 = vld [vmem:[%s1469_s1 + $0xb0] ss:$12 sps:$4 sm:$0xff]   ;;  %v1130_v35 = vld [vmem:[%s1469_s1 + $0x98] ss:$12 sps:$4 sm:$0xff]   ;;  %v954_v41 = vld [vmem:[%s1470_s2] ss:$0 sm:$0xff] }
  0x16   : > { %1052 = vmatpush3.bf16.msra.mxu1 %v1123_v4  ;;  %1079 = vmatprep.subr.bf16.mxu0 %v1129_v34  ;;  %v1133_v38 = vld [vmem:[%s1469_s1 + $0x50] ss:$12 sps:$4 sm:$0xff]  }
  0x17   : > { %1053 = vmatprep.subr.bf16.mxu1 %v1124_v14  ;;  %1080 = vmatpush3.bf16.msra.mxu0 %v1129_v34  ;;  %v1136_v34 = vld [vmem:[%s1469_s1 + $0x8] ss:$12 sps:$4 sm:$0xff]  }
  0x18   : > { %1081 = vmatprep.subr.bf16.mxu0 %v1130_v35 }
  0x1a   : > { %1054 = vmatpush3.bf16.msra.mxu1 %v1124_v14 }
  0x1b   : > { %1055 = vmatprep.subr.bf16.mxu1 %v1125_v18  ;;  %1082 = vmatpush3.bf16.msra.mxu0 %v1130_v35 }
  0x1c   : > { %1036 = vmatmul.mubr.msk.bf16.gmra.mxu0 %vm256_vm0, %v194_v20  ;;  %1083 = vmatprep.subr.bf16.mxu0 %v1131_v36 }
  0x1d   : > { %1039 = vmatprep.mubr.msk.bf16.mxu0 %vm256_vm0, %v195_v21 }
  0x1e   : > { %1056 = vmatpush3.bf16.msra.mxu1 %v1125_v18 }
  0x1f   : > { %1057 = vmatprep.subr.bf16.mxu1 %v1126_v31  ;;  %1084 = vmatpush3.bf16.msra.mxu0 %v1131_v36 }
  0x20   : > { %1085 = vmatprep.subr.bf16.mxu0 %v1132_v37 }
  0x22   : > { %1058 = vmatpush3.bf16.msra.mxu1 %v1126_v31 }
  0x23   : > { %1059 = vmatprep.subr.bf16.mxu1 %v1127_v32  ;;  %1086 = vmatpush3.bf16.msra.mxu0 %v1132_v37  ;;  %v965_v37 = vld [vmem:[%s1470_s2 + $0x1] ss:$0 sm:$0xff] }
  0x24   : > { %1040 = vmatmul.mubr.msk.bf16.gmra.mxu0 %vm256_vm0, %v196_v26  ;;  %1087 = vmatprep.subr.bf16.mxu0 %v1133_v38 }
  0x25   : > { %1043 = vmatprep.mubr.msk.bf16.mxu0 %vm256_vm0, %v197_v27 }
  0x26   : > { %1060 = vmatpush3.bf16.msra.mxu1 %v1127_v32  ;;  %v1134_v32 = vld [vmem:[%s1469_s1 + $0x38] ss:$12 sps:$4 sm:$0xff]  }
  0x27   : > { %1061 = vmatprep.subr.bf16.mxu1 %v1128_v33  ;;  %1088 = vmatpush3.bf16.msra.mxu0 %v1133_v38 }
  0x28   : > { %1089 = vmatprep.subr.bf16.mxu0 %v1134_v32 }
  0x2a   : > { %1062 = vmatpush3.bf16.msra.mxu1 %v1128_v33  ;;  %v1135_v33 = vld [vmem:[%s1469_s1 + $0x20] ss:$12 sps:$4 sm:$0xff]  }
  0x2b   : > { %1090 = vmatpush3.bf16.msra.mxu0 %v1134_v32 }
  0x2c   : > { %1044 = vmatmul.mubr.msk.bf16.gmra.mxu0 %vm256_vm0, %v198_v30  ;;  %1091 = vmatprep.subr.bf16.mxu0 %v1135_v33 }
  0x2f   : > { %1092 = vmatpush3.bf16.msra.mxu0 %v1135_v33 }
  0x30   : > { %1093 = vmatprep.subr.bf16.mxu0 %v1136_v34 }
  0x33   : > { %1094 = vmatpush3.bf16.msra.mxu0 %v1136_v34 }
  0xd4   : > { %v1033_v39 = vpop.f32.mrf.mxu0 }
  0xd5   : > { %v324_v45 = vadd.f32 %v1033_v39, %v954_v41 }
  0xd6   : > { %v315_v40 = vpop.f32.mrf.mxu0 }
  0xd7   : > { %v316_v43 = vadd.f32 %v954_v41, %v315_v40  ;;  %v380_v52 = vmax.f32 %v324_v45, 0.0 }
  0xd8   : > { %v1034_v42 = vpop.f32.mrf.mxu0 }
  0xd9   : > { %v327_v44 = vadd.f32 %v1034_v42, %v954_v41  ;;  %v378_v50 = vmax.f32 %v316_v43, 0.0 }
  0xda   : > { %v318_v46 = vpop.f32.mrf.mxu0 }
  0xdb   : > { %v319_v47 = vadd.f32 %v954_v41, %v318_v46  ;;  %v381_v48 = vmax.f32 %v327_v44, 0.0 }
  0xdc   : > { %v1037_v49 = vpop.f32.mrf.mxu0 }
  0xdd   : > { %v379_v51 = vmax.f32 %v319_v47, 0.0  ;;  %v395_v55 = vpack.c.bf16 %v381_v48, %v380_v52  ;;  %v340_v59 = vadd.f32 %v1037_v49, %v954_v41 }
  0xde   : > { %v331_v53 = vpop.f32.mrf.mxu0 }
  0xdf   : > { %v394_v54 = vpack.c.bf16 %v379_v51, %v378_v50  ;;  %v332_v57 = vadd.f32 %v954_v41, %v331_v53  ;;  %v384_v2 = vmax.f32 %v340_v59, 0.0 }
  0xe0   : > { %v1038_v56 = vpop.f32.mrf.mxu0 }
  0xe1   : > { %v343_v58 = vadd.f32 %v1038_v56, %v954_v41  ;;  %1063 = vmatprep.mubr.bf16.mxu1 %v394_v54  ;;  %v382_v0 = vmax.f32 %v332_v57, 0.0 }
  0xe2   : > { %v334_v60 = vpop.f32.mrf.mxu0  ;;  %1064 = vmatmul.mubr.bf16.vlgmr.msra.gmra.mxu1 %v395_v55 }
  0xe3   : > { %v335_v61 = vadd.f32 %v954_v41, %v334_v60  ;;  %v385_v62 = vmax.f32 %v343_v58, 0.0 }
  0xe4   : > { %v1041_v63 = vpop.f32.mrf.mxu0 }
  0xe5   : > { %v383_v1 = vmax.f32 %v335_v61, 0.0  ;;  %v397_v5 = vpack.c.bf16 %v385_v62, %v384_v2  ;;  %v356_v9 = vadd.f32 %v1041_v63, %v954_v41 }
  0xe6   : > { %v347_v3 = vpop.f32.mrf.mxu0 }
  0xe7   : > { %v396_v4 = vpack.c.bf16 %v383_v1, %v382_v0  ;;  %v348_v7 = vadd.f32 %v954_v41, %v347_v3  ;;  %v388_v16 = vmax.f32 %v356_v9, 0.0 }
  0xe8   : > { %v1042_v6 = vpop.f32.mrf.mxu0 }
  0xe9   : > { %v359_v8 = vadd.f32 %v1042_v6, %v954_v41  ;;  %1067 = vmatprep.mubr.bf16.mxu1 %v396_v4  ;;  %v386_v14 = vmax.f32 %v348_v7, 0.0 }
  0xea   : > { %v350_v10 = vpop.f32.mrf.mxu0  ;;  %1068 = vmatmul.mubr.bf16.gmra.mxu1 %v397_v5 }
  0xeb   : > { %v351_v11 = vadd.f32 %v954_v41, %v350_v10  ;;  %v389_v12 = vmax.f32 %v359_v8, 0.0 }
  0xec   : > { %v1045_v13 = vpop.f32.mrf.mxu0 }
  0xed   : > { %v387_v15 = vmax.f32 %v351_v11, 0.0  ;;  %v399_v19 = vpack.c.bf16 %v389_v12, %v388_v16  ;;  %v372_v23 = vadd.f32 %v1045_v13, %v954_v41 }
  0xee   : > { %v363_v17 = vpop.f32.mrf.mxu0 }
  0xef   : > { %v398_v18 = vpack.c.bf16 %v387_v15, %v386_v14  ;;  %v364_v21 = vadd.f32 %v954_v41, %v363_v17  ;;  %v392_v29 = vmax.f32 %v372_v23, 0.0 }
  0xf0   : > { %v1046_v20 = vpop.f32.mrf.mxu0 }
  0xf1   : > { %v375_v22 = vadd.f32 %v1046_v20, %v954_v41  ;;  %1071 = vmatprep.mubr.bf16.mxu1 %v398_v18  ;;  %v390_v27 = vmax.f32 %v364_v21, 0.0 }
  0xf2   : > { %v366_v24 = vpop.f32.mrf.mxu0  ;;  %1072 = vmatmul.mubr.bf16.gmra.mxu1 %v399_v19 }
  0xf3   : > { %v367_v25 = vadd.f32 %v954_v41, %v366_v24  ;;  %v393_v26 = vmax.f32 %v375_v22, 0.0 }
  0xf5   : > { %v391_v28 = vmax.f32 %v367_v25, 0.0  ;;  %v401_v31 = vpack.c.bf16 %v393_v26, %v392_v29 }
  0xf7   : > { %v400_v30 = vpack.c.bf16 %v391_v28, %v390_v27  ;;  %v974_v28 = vld [vmem:[%s1470_s2 + $0x2] ss:$0 sm:$0xff] }
  0xf9   : > { %1075 = vmatprep.mubr.bf16.mxu1 %v400_v30 }
  0xfa   : > { %1076 = vmatmul.mubr.bf16.gmra.mxu1 %v401_v31 }
 0x1a2   : > { %v1065_v35 = vpop.f32.mrf.mxu1 }
 0x1a3   : > { %v499_v41 = vadd.f32 %v1065_v35, %v965_v37 }
 0x1a4   : > { %v490_v36 = vpop.f32.mrf.mxu1 }
 0x1a5   : > { %v491_v39 = vadd.f32 %v965_v37, %v490_v36  ;;  %v555_v48 = vmax.f32 %v499_v41, 0.0 }
 0x1a6   : > { %v1066_v38 = vpop.f32.mrf.mxu1 }
 0x1a7   : > { %v502_v40 = vadd.f32 %v1066_v38, %v965_v37  ;;  %v553_v46 = vmax.f32 %v491_v39, 0.0 }
 0x1a8   : > { %v493_v42 = vpop.f32.mrf.mxu1 }
 0x1a9   : > { %v494_v43 = vadd.f32 %v965_v37, %v493_v42  ;;  %v556_v44 = vmax.f32 %v502_v40, 0.0 }
 0x1aa   : > { %v1069_v45 = vpop.f32.mrf.mxu1 }
 0x1ab   : > { %v554_v47 = vmax.f32 %v494_v43, 0.0  ;;  %v570_v51 = vpack.c.bf16 %v556_v44, %v555_v48  ;;  %v515_v55 = vadd.f32 %v1069_v45, %v965_v37 }
 0x1ac   : > { %v506_v49 = vpop.f32.mrf.mxu1 }
 0x1ad   : > { %v569_v50 = vpack.c.bf16 %v554_v47, %v553_v46  ;;  %v507_v53 = vadd.f32 %v965_v37, %v506_v49  ;;  %v559_v62 = vmax.f32 %v515_v55, 0.0 }
 0x1ae   : > { %v1070_v52 = vpop.f32.mrf.mxu1 }
 0x1af   : > { %v518_v54 = vadd.f32 %v1070_v52, %v965_v37  ;;  %1095 = vmatprep.mubr.bf16.mxu0 %v569_v50  ;;  %v557_v60 = vmax.f32 %v507_v53, 0.0 }
 0x1b0   : > { %v509_v56 = vpop.f32.mrf.mxu1  ;;  %1096 = vmatmul.mubr.bf16.vlgmr.msra.gmra.mxu0 %v570_v51 }
 0x1b1   : > { %v510_v57 = vadd.f32 %v965_v37, %v509_v56  ;;  %v560_v58 = vmax.f32 %v518_v54, 0.0 }
 0x1b2   : > { %v1073_v59 = vpop.f32.mrf.mxu1 }
 0x1b3   : > { %v558_v61 = vmax.f32 %v510_v57, 0.0  ;;  %v572_v1 = vpack.c.bf16 %v560_v58, %v559_v62  ;;  %v531_v5 = vadd.f32 %v1073_v59, %v965_v37 }
 0x1b4   : > { %v522_v63 = vpop.f32.mrf.mxu1 }
 0x1b5   : > { %v571_v0 = vpack.c.bf16 %v558_v61, %v557_v60  ;;  %v523_v3 = vadd.f32 %v965_v37, %v522_v63  ;;  %v563_v12 = vmax.f32 %v531_v5, 0.0 }
 0x1b6   : > { %v1074_v2 = vpop.f32.mrf.mxu1 }
 0x1b7   : > { %v534_v4 = vadd.f32 %v1074_v2, %v965_v37  ;;  %1099 = vmatprep.mubr.bf16.mxu0 %v571_v0  ;;  %v561_v10 = vmax.f32 %v523_v3, 0.0 }
 0x1b8   : > { %v525_v6 = vpop.f32.mrf.mxu1  ;;  %1100 = vmatmul.mubr.bf16.gmra.mxu0 %v572_v1 }
 0x1b9   : > { %v526_v7 = vadd.f32 %v965_v37, %v525_v6  ;;  %v564_v8 = vmax.f32 %v534_v4, 0.0 }
 0x1ba   : > { %v1077_v9 = vpop.f32.mrf.mxu1 }
 0x1bb   : > { %v562_v11 = vmax.f32 %v526_v7, 0.0  ;;  %v574_v15 = vpack.c.bf16 %v564_v8, %v563_v12  ;;  %v547_v19 = vadd.f32 %v1077_v9, %v965_v37 }
 0x1bc   : > { %v538_v13 = vpop.f32.mrf.mxu1 }
 0x1bd   : > { %v573_v14 = vpack.c.bf16 %v562_v11, %v561_v10  ;;  %v539_v17 = vadd.f32 %v965_v37, %v538_v13  ;;  %v567_v25 = vmax.f32 %v547_v19, 0.0 }
 0x1be   : > { %v1078_v16 = vpop.f32.mrf.mxu1 }
 0x1bf   : > { %v550_v18 = vadd.f32 %v1078_v16, %v965_v37  ;;  %1103 = vmatprep.mubr.bf16.mxu0 %v573_v14  ;;  %v565_v23 = vmax.f32 %v539_v17, 0.0 }
 0x1c0   : > { %v541_v20 = vpop.f32.mrf.mxu1  ;;  %1104 = vmatmul.mubr.bf16.gmra.mxu0 %v574_v15 }
 0x1c1   : > { %v542_v21 = vadd.f32 %v965_v37, %v541_v20  ;;  %v568_v22 = vmax.f32 %v550_v18, 0.0 }
 0x1c3   : > { %v566_v24 = vmax.f32 %v542_v21, 0.0  ;;  %v576_v27 = vpack.c.bf16 %v568_v22, %v567_v25 }
 0x1c5   : > { %v575_v26 = vpack.c.bf16 %v566_v24, %v565_v23 }
 0x1c7   : > { %1107 = vmatprep.mubr.bf16.mxu0 %v575_v26 }
 0x1c8   : > { %1108 = vmatmul.mubr.bf16.gmra.mxu0 %v576_v27 }
 0x270   : > { %v1097_v29 = vpop.f32.mrf.mxu0 }
 0x271   : > { %v674_v30 = vadd.f32 %v1097_v29, %v974_v28 }
 0x272   : > { %v665_v31 = vpop.f32.mrf.mxu0 }
 0x273   : > { %v666_v32 = vadd.f32 %v974_v28, %v665_v31  ;;  %732 = vmax.xlane.f32.xlu1 %v674_v30 }
 0x274   : > { %v1098_v33 = vpop.f32.mrf.mxu0 }
 0x275   : > { %v677_v34 = vadd.f32 %v1098_v33, %v974_v28  ;;  %728 = vmax.xlane.f32.xlu0 %v666_v32 }
 0x276   : > { %v668_v35 = vpop.f32.mrf.mxu0 }
 0x277   : > { %v669_v36 = vadd.f32 %v974_v28, %v668_v35  ;;  %734 = vmax.xlane.f32.xlu1 %v677_v34 }
 0x278   : > { %v1101_v37 = vpop.f32.mrf.mxu0 }
 0x279   : > { %730 = vmax.xlane.f32.xlu0 %v669_v36  ;;  %v690_v39 = vadd.f32 %v1101_v37, %v974_v28 }
 0x27a   : > { %v681_v38 = vpop.f32.mrf.mxu0 }
 0x27b   : > { %v682_v43 = vadd.f32 %v974_v28, %v681_v38 }
 0x27c   : > { %v1102_v40 = vpop.f32.mrf.mxu0 }
 0x27d   : > { %v693_v41 = vadd.f32 %v1102_v40, %v974_v28  ;;  %740 = vmax.xlane.f32.xlu0 %v690_v39 }
 0x27e   : > { %v684_v42 = vpop.f32.mrf.mxu0 }
 0x27f   : > { %742 = vmax.xlane.f32.xlu1 %v693_v41  ;;  %v685_v45 = vadd.f32 %v974_v28, %v684_v42 }
 0x280   : > { %v1105_v44 = vpop.f32.mrf.mxu0 }
 0x281   : > { %736 = vmax.xlane.f32.xlu0 %v682_v43  ;;  %v706_v47 = vadd.f32 %v1105_v44, %v974_v28 }
 0x282   : > { %v697_v46 = vpop.f32.mrf.mxu0 }
 0x283   : > { %738 = vmax.xlane.f32.xlu1 %v685_v45  ;;  %v1336_v51 = vadd.f32 %v974_v28, %v697_v46 }
 0x284   : > { %v1106_v48 = vpop.f32.mrf.mxu0 }
 0x285   : > { %v1334_v49 = vadd.f32 %v1106_v48, %v974_v28  ;;  %748 = vmax.xlane.f32.xlu0 %v706_v47 }
 0x286   : > { %v700_v50 = vpop.f32.mrf.mxu0 }
 0x287   : > { %750 = vmax.xlane.f32.xlu1 %v1334_v49  ;;  %v1339_v53 = vadd.f32 %v974_v28, %v700_v50 }
 0x288   : > { %v1109_v52 = vpop.f32.mrf.mxu0 }
 0x289   : > { %744 = vmax.xlane.f32.xlu0 %v1336_v51  ;;  %v1346_v58 = vadd.f32 %v1109_v52, %v974_v28 }
 0x28a   : > { %v713_v54 = vpop.f32.mrf.mxu0 }
 0x28b   : > { %v1342_v55 = vadd.f32 %v974_v28, %v713_v54  ;;  %746 = vmax.xlane.f32.xlu1 %v1339_v53 }
 0x28c   : > { %v1110_v56 = vpop.f32.mrf.mxu0 }
 0x28d   : > { %752 = vmax.xlane.f32.xlu0 %v1342_v55  ;;  %v1352_v60 = vadd.f32 %v1110_v56, %v974_v28 }
 0x28e   : > { %v716_v57 = vpop.f32.mrf.mxu0 }
 0x28f   : > { %v1348_v59 = vadd.f32 %v974_v28, %v716_v57 }
 0x291   : > { %754 = vmax.xlane.f32.xlu1 %v1348_v59  ;;  %756 = vmax.xlane.f32.xlu0 %v1346_v58 }
 0x295   : > { %758 = vmax.xlane.f32.xlu1 %v1352_v60 }
 0x2fc   : > { %v733_v61 = vpop.xlane.xlu1 %732 }
 0x2fd   : > { %v762_v62 = vsub.f32 %v674_v30, %v733_v61 }
 0x2fe   : > { %v729_v63 = vpop.xlane.xlu0 %728 }
 0x2ff   : > { %v780_v0 = vmul.f32 1.442695, %v762_v62  ;;  %v760_v1 = vsub.f32 %v666_v32, %v729_v63 }
 0x300   : > { %v735_v2 = vpop.xlane.xlu1 %734 }
 0x301   : > { %1137 = vpow2.f32 %v780_v0  ;;  %v776_v3 = vmul.f32 1.442695, %v760_v1  ;;  %v763_v4 = vsub.f32 %v677_v34, %v735_v2 }
 0x302   : > { %v731_v5 = vpop.xlane.xlu0 %730 }
 0x303   : > { %v782_v6 = vmul.f32 1.442695, %v763_v4  ;;  %v761_v7 = vsub.f32 %v669_v36, %v731_v5  ;;  %1139 = vpow2.f32 %v776_v3 }
 0x305   : > { %1141 = vpow2.f32 %v782_v6  ;;  %v778_v8 = vmul.f32 1.442695, %v761_v7 }
 0x306   : > { %v741_v9 = vpop.xlane.xlu0 %740 }
 0x307   : > { %v766_v10 = vsub.f32 %v690_v39, %v741_v9  ;;  %1143 = vpow2.f32 %v778_v8 }
 0x308   : > { %v743_v11 = vpop.xlane.xlu1 %742 }
 0x309   : > { %v788_v12 = vmul.f32 1.442695, %v766_v10  ;;  %v767_v13 = vsub.f32 %v693_v41, %v743_v11 }
 0x30a   : > { %v737_v14 = vpop.xlane.xlu0 %736 }
 0x30b   : > { %1145 = vpow2.f32 %v788_v12  ;;  %v790_v15 = vmul.f32 1.442695, %v767_v13  ;;  %v764_v16 = vsub.f32 %v682_v43, %v737_v14 }
 0x30c   : > { %v739_v17 = vpop.xlane.xlu1 %738 }
 0x30d   : > { %1147 = vpow2.f32 %v790_v15  ;;  %v784_v18 = vmul.f32 1.442695, %v764_v16  ;;  %v765_v19 = vsub.f32 %v685_v45, %v739_v17 }
 0x30e   : > { %v1355_v20 = vpop.eup %1137  ;;  %v749_v21 = vpop.xlane.xlu0 %748 }
 0x30f   : > { %1149 = vpow2.f32 %v784_v18  ;;  %v786_v22 = vmul.f32 1.442695, %v765_v19  ;;  %v770_v23 = vsub.f32 %v706_v47, %v749_v21  ;;  %812 = vadd.xlane.f32.xlu0 %v1355_v20 }
 0x310   : > { %v751_v24 = vpop.xlane.xlu1 %750  ;;  %v1358_v25 = vpop.eup %1139 }
 0x311   : > { %1151 = vpow2.f32 %v786_v22  ;;  %v796_v26 = vmul.f32 1.442695, %v770_v23  ;;  %v771_v27 = vsub.f32 %v1334_v49, %v751_v24 }
 0x312   : > { %v1361_v28 = vpop.eup %1141  ;;  %v745_v29 = vpop.xlane.xlu0 %744 }
 0x313   : > { %1153 = vpow2.f32 %v796_v26  ;;  %v798_v30 = vmul.f32 1.442695, %v771_v27  ;;  %v768_v31 = vsub.f32 %v1336_v51, %v745_v29  ;;  %814 = vadd.xlane.f32.xlu1 %v1361_v28  ;;  %808 = vadd.xlane.f32.xlu0 %v1358_v25 }
 0x314   : > { %v747_v32 = vpop.xlane.xlu1 %746  ;;  %v1367_v35 = vpop.eup %1143 }
 0x315   : > { %1155 = vpow2.f32 %v798_v30  ;;  %v792_v33 = vmul.f32 1.442695, %v768_v31  ;;  %v769_v34 = vsub.f32 %v1339_v53, %v747_v32 }
 0x316   : > { %v753_v36 = vpop.xlane.xlu0 %752 }
 0x317   : > { %1157 = vpow2.f32 %v792_v33  ;;  %v794_v37 = vmul.f32 1.442695, %v769_v34  ;;  %v772_v38 = vsub.f32 %v1342_v55, %v753_v36  ;;  %810 = vadd.xlane.f32.xlu1 %v1367_v35 }
 0x318   : > { %v1371_v39 = vpop.eup %1145 }
 0x319   : > { %1159 = vpow2.f32 %v794_v37  ;;  %v800_v40 = vmul.f32 1.442695, %v772_v38  ;;  %820 = vadd.xlane.f32.xlu0 %v1371_v39 }
 0x31a   : > { %v1374_v41 = vpop.eup %1147  ;;  %v755_v42 = vpop.xlane.xlu1 %754 }
 0x31b   : > { %v757_v43 = vpop.xlane.xlu0 %756  ;;  %1161 = vpow2.f32 %v800_v40  ;;  %v773_v44 = vsub.f32 %v1348_v59, %v755_v42  ;;  %822 = vadd.xlane.f32.xlu1 %v1374_v41 }
 0x31c   : > { %v774_v45 = vsub.f32 %v1346_v58, %v757_v43  ;;  %v1379_v46 = vpop.eup %1149 }
 0x31d   : > { %v802_v47 = vmul.f32 1.442695, %v773_v44  ;;  %816 = vadd.xlane.f32.xlu0 %v1379_v46 }
 0x31e   : > { %v804_v48 = vmul.f32 1.442695, %v774_v45  ;;  %v1382_v49 = vpop.eup %1151  ;;  %v759_v50 = vpop.xlane.xlu1 %758 }
 0x31f   : > { %1163 = vpow2.f32 %v802_v47  ;;  %v775_v51 = vsub.f32 %v1352_v60, %v759_v50  ;;  %818 = vadd.xlane.f32.xlu1 %v1382_v49 }
 0x320   : > { %v1386_v52 = vpop.eup %1153  ;;  %1165 = vpow2.f32 %v804_v48 }
 0x321   : > { %v806_v53 = vmul.f32 1.442695, %v775_v51  ;;  %828 = vadd.xlane.f32.xlu0 %v1386_v52 }
 0x322   : > { %v1389_v54 = vpop.eup %1155 }
 0x323   : > { %1167 = vpow2.f32 %v806_v53  ;;  %830 = vadd.xlane.f32.xlu1 %v1389_v54 }
 0x324   : > { %v1392_v55 = vpop.eup %1157 }
 0x325   : > { %824 = vadd.xlane.f32.xlu0 %v1392_v55 }
 0x326   : > { %v1395_v56 = vpop.eup %1159 }
 0x327   : > { %826 = vadd.xlane.f32.xlu1 %v1395_v56 }
 0x328   : > { %v1398_v57 = vpop.eup %1161 }
 0x329   : > { %832 = vadd.xlane.f32.xlu0 %v1398_v57 }
 0x32c   : > { %v1401_v58 = vpop.eup %1163 }
 0x32d   : > { %v1403_v59 = vpop.eup %1165  ;;  %834 = vadd.xlane.f32.xlu1 %v1401_v58 }
 0x32e   : > { %836 = vadd.xlane.f32.xlu0 %v1403_v59 }
 0x330   : > { %v1407_v60 = vpop.eup %1167 }
 0x331   : > { %838 = vadd.xlane.f32.xlu1 %v1407_v60 }
 0x398   : > { %v813_v61 = vpop.xlane.xlu0 %812 }
 0x399   : > { %1169 = vrcp.f32 %v813_v61 }
 0x39c   : > { %v815_v62 = vpop.xlane.xlu1 %814  ;;  %v809_v63 = vpop.xlane.xlu0 %808 }
 0x39d   : > { %1171 = vrcp.f32 %v815_v62 }
 0x39e   : > { %1173 = vrcp.f32 %v809_v63 }
 0x3a0   : > { %v811_v0 = vpop.xlane.xlu1 %810 }
 0x3a1   : > { %1175 = vrcp.f32 %v811_v0 }
 0x3a2   : > { %v821_v1 = vpop.xlane.xlu0 %820 }
 0x3a3   : > { %1177 = vrcp.f32 %v821_v1 }
 0x3a4   : > { %v823_v2 = vpop.xlane.xlu1 %822 }
 0x3a5   : > { %1179 = vrcp.f32 %v823_v2 }
 0x3a6   : > { %v1170_v3 = vpop.eup %1169  ;;  %v817_v4 = vpop.xlane.xlu0 %816 }
 0x3a7   : > { %v845_v5 = vmul.f32 %v1170_v3, %v1355_v20  ;;  %1181 = vrcp.f32 %v817_v4 }
 0x3a8   : > { %v819_v6 = vpop.xlane.xlu1 %818 }
 0x3a9   : > { %875 = vst.msk [vmem:[%s1415_s13 + $0x10] sm:$0xff] %vm872_vm1, %v845_v5  ;;  %1183 = vrcp.f32 %v819_v6 }
 0x3aa   : > { %v1172_v7 = vpop.eup %1171  ;;  %v829_v8 = vpop.xlane.xlu0 %828 }
 0x3ab   : > { %v1174_v9 = vpop.eup %1173  ;;  %v847_v10 = vmul.f32 %v1172_v7, %v1361_v28  ;;  %1185 = vrcp.f32 %v829_v8 }
 0x3ac   : > { %v841_v11 = vmul.f32 %v1174_v9, %v1358_v25  ;;  %v831_v12 = vpop.xlane.xlu1 %830 }
 0x3ad   : > { %876 = vst.msk [vmem:[%s1415_s13 + $0x18] sm:$0xff] %vm872_vm1, %v847_v10  ;;  %1187 = vrcp.f32 %v831_v12 }
 0x3ae   : > { %v1176_v13 = vpop.eup %1175  ;;  %873 = vst.msk [vmem:[%s1415_s13] sm:$0xff] %vm872_vm1, %v841_v11  ;;  %v825_v14 = vpop.xlane.xlu0 %824 }
 0x3af   : > { %v843_v15 = vmul.f32 %v1176_v13, %v1367_v35  ;;  %1189 = vrcp.f32 %v825_v14 }
 0x3b0   : > { %v1178_v16 = vpop.eup %1177  ;;  %v827_v17 = vpop.xlane.xlu1 %826 }
 0x3b1   : > { %874 = vst.msk [vmem:[%s1415_s13 + $0x8] sm:$0xff] %vm872_vm1, %v843_v15  ;;  %v853_v18 = vmul.f32 %v1178_v16, %v1371_v39  ;;  %1191 = vrcp.f32 %v827_v17 }
 0x3b2   : > { %v1180_v19 = vpop.eup %1179  ;;  %v833_v20 = vpop.xlane.xlu0 %832 }
 0x3b3   : > { %879 = vst.msk [vmem:[%s1415_s13 + $0x30] sm:$0xff] %vm872_vm1, %v853_v18  ;;  %v855_v21 = vmul.f32 %v1180_v19, %v1374_v41  ;;  %1193 = vrcp.f32 %v833_v20 }
 0x3b4   : > { %v1182_v22 = vpop.eup %1181 }
 0x3b5   : > { %880 = vst.msk [vmem:[%s1415_s13 + $0x38] sm:$0xff] %vm872_vm1, %v855_v21  ;;  %v849_v23 = vmul.f32 %v1182_v22, %v1379_v46 }
 0x3b6   : > { %v1184_v24 = vpop.eup %1183  ;;  %v835_v25 = vpop.xlane.xlu1 %834 }
 0x3b7   : > { %877 = vst.msk [vmem:[%s1415_s13 + $0x20] sm:$0xff] %vm872_vm1, %v849_v23  ;;  %v851_v26 = vmul.f32 %v1184_v24, %v1382_v49  ;;  %1195 = vrcp.f32 %v835_v25  ;;  %v837_v27 = vpop.xlane.xlu0 %836 }
 0x3b8   : > { %v1186_v28 = vpop.eup %1185  ;;  %1197 = vrcp.f32 %v837_v27 }
 0x3b9   : > { %878 = vst.msk [vmem:[%s1415_s13 + $0x28] sm:$0xff] %vm872_vm1, %v851_v26  ;;  %v861_v29 = vmul.f32 %v1186_v28, %v1386_v52 }
 0x3ba   : > { %v1188_v30 = vpop.eup %1187  ;;  %v839_v31 = vpop.xlane.xlu1 %838 }
 0x3bb   : > { %883 = vst.msk [vmem:[%s1415_s13 + $0x50] sm:$0xff] %vm872_vm1, %v861_v29  ;;  %v863_v32 = vmul.f32 %v1188_v30, %v1389_v54  ;;  %1199 = vrcp.f32 %v839_v31 }
 0x3bc   : > { %v1190_v33 = vpop.eup %1189 }
 0x3bd   : > { %884 = vst.msk [vmem:[%s1415_s13 + $0x58] sm:$0xff] %vm872_vm1, %v863_v32  ;;  %v857_v34 = vmul.f32 %v1190_v33, %v1392_v55 }
 0x3be   : > { %v1192_v35 = vpop.eup %1191 }
 0x3bf   : > { %881 = vst.msk [vmem:[%s1415_s13 + $0x40] sm:$0xff] %vm872_vm1, %v857_v34  ;;  %v859_v36 = vmul.f32 %v1192_v35, %v1395_v56 }
 0x3c0   : > { %v1194_v37 = vpop.eup %1193 }
 0x3c1   : > { %882 = vst.msk [vmem:[%s1415_s13 + $0x48] sm:$0xff] %vm872_vm1, %v859_v36  ;;  %v865_v38 = vmul.f32 %v1194_v37, %v1398_v57 }
 0x3c3   : > { %885 = vst.msk [vmem:[%s1415_s13 + $0x60] sm:$0xff] %vm872_vm1, %v865_v38 }
 0x3c4   : > { %v1196_v39 = vpop.eup %1195 }
 0x3c5   : > { %v1198_v40 = vpop.eup %1197  ;;  %v867_v41 = vmul.f32 %v1196_v39, %v1401_v58 }
 0x3c6   : > { %v869_v42 = vmul.f32 %v1198_v40, %v1403_v59 }
 0x3c7   : > { %886 = vst.msk [vmem:[%s1415_s13 + $0x68] sm:$0xff] %vm872_vm1, %v867_v41 }
 0x3c8   : > { %v1200_v43 = vpop.eup %1199  ;;  %887 = vst.msk [vmem:[%s1415_s13 + $0x70] sm:$0xff] %vm872_vm1, %v869_v42 }
 0x3c9   : > { %v871_v44 = vmul.f32 %v1200_v43, %v1407_v60 }
 0x3cb   : > { %888 = vst.msk [vmem:[%s1415_s13 + $0x78] sm:$0xff] %vm872_vm1, %v871_v44 }
 0x3cc PF: > { %s13_s12 = sadd.s32 1, %s1207_s12  }
 0x3cd   : > { %p10_p4 = scmp.ge.s32.totalorder %s13_s12, 4  }
 0x3cf   :  { %12 = sbr.rel (!%p10_p4) target bundleno = 1 (0x1), region = 62 }

</bundles_post_ra>
